<compile_context>
chip_gen: v5e
topology: v5e:2x2
jax: 0.10.0
libtpu: 0.0.40
codegen_flags: <defaults>
</compile_context>

<pallas_src>
from typing import NamedTuple

import jax
import jax.numpy as jnp
from jax.experimental import pallas as pl
from jax.experimental.pallas import tpu as pltpu

_LANE = 128
_MIB = 1024 * 1024


def _round_up(x, m):
    return ((x + m - 1) // m) * m


def _pad2d(a, rows, cols):
    r, c = a.shape
    if r == rows and c == cols:
        return a
    return jnp.pad(a, ((0, rows - r), (0, cols - c)))


def _tpu_vmem_plan():
    """Return (vmem_budget_bytes, multi_core) for the attached TPU generation."""
    cap = None
    try:
        info = pltpu.get_tpu_info()
        cap = int(getattr(info, "vmem_capacity_bytes"))
    except Exception:
        cap = None
    if cap is None:
        cap = 128 * _MIB  # conservative default (v5e/v6e class)
    if cap <= 64 * _MIB:
        # v7x-like: 64 MiB per TensorCore, 2 TCs/chip. Leave headroom for
        # compiler-internal scratch; split the batch across cores.
        return min(int(cap * 0.82), 52 * _MIB), True
    # v5e/v6e: 128 MiB physical VMEM, single TensorCore.
    return min(int(cap * 0.85), 110 * _MIB), False


class PackedFNNet(NamedTuple):
    w1: jax.Array  # (d_in, d_h)  compute dtype (bf16)
    b1: jax.Array  # (1, d_h)     f32
    w2: jax.Array  # (d_h, d_h)   compute dtype
    b2: jax.Array  # (1, d_h)     f32
    w3: jax.Array  # (d_h, d_out) compute dtype
    b3: jax.Array  # (1, d_out)   f32
    input_dim: int
    interm_dim: int
    output_dim: int


def pack_params(params, *, compute_dtype=jnp.bfloat16):
    """One-time weight re-layout: PyTorch (out,in) -> (in,out), pad to 128 lanes, cast."""
    w1, b1, w2, b2, w3, b3 = params
    input_dim = w1.shape[1]
    interm_dim = w1.shape[0]
    output_dim = w3.shape[0]
    d_in = _round_up(input_dim, _LANE)
    d_h = _round_up(interm_dim, _LANE)
    d_out = _round_up(output_dim, _LANE)
    return PackedFNNet(
        w1=_pad2d(w1.T, d_in, d_h).astype(compute_dtype),
        b1=_pad2d(b1.reshape(1, -1), 1, d_h).astype(jnp.float32),
        w2=_pad2d(w2.T, d_h, d_h).astype(compute_dtype),
        b2=_pad2d(b2.reshape(1, -1), 1, d_h).astype(jnp.float32),
        w3=_pad2d(w3.T, d_h, d_out).astype(compute_dtype),
        b3=_pad2d(b3.reshape(1, -1), 1, d_out).astype(jnp.float32),
        input_dim=int(input_dim),
        interm_dim=int(interm_dim),
        output_dim=int(output_dim),
    )


def fnnet_kernel(x_ref, w1_ref, b1_ref, w2_ref, b2_ref, w3_ref, b3_ref, o_ref):
    # x_ref:  (TM, d_in)   native dtype   w1_ref: (d_in, d_h) bf16   b1_ref: (1, d_h)  f32
    # w2_ref: (d_h, d_h)   bf16           b2_ref: (1, d_h)    f32
    # w3_ref: (d_h, d_out) bf16           b3_ref: (1, d_out)  f32
    # o_ref:  (TM, d_out)
    cd = w1_ref.dtype
    x = x_ref[...].astype(cd)  # cast to MXU dtype after the native-dtype load

    # fc1 + relu (dropout p=0.2 -> identity in eval mode); bias/relu stay f32.
    h1 = jnp.dot(x, w1_ref[...], preferred_element_type=jnp.float32) + b1_ref[...]
    h1 = jnp.maximum(h1, 0.0).astype(cd)

    # fc2 + relu (dropout p=0.2 -> identity in eval mode)
    h2 = jnp.dot(h1, w2_ref[...], preferred_element_type=jnp.float32) + b2_ref[...]
    h2 = jnp.maximum(h2, 0.0).astype(cd)

    # fc3
    out = jnp.dot(h2, w3_ref[...], preferred_element_type=jnp.float32) + b3_ref[...]
    o_ref[...] = out.astype(o_ref.dtype)


def fnnet_forward(x, packed: PackedFNNet, *, tile_m=None, out_dtype=None):
    """x: any shape whose trailing dims flatten to input_dim (PyTorch .view(-1, input_dim)).

    packed: result of pack_params() (weights pre-padded/transposed/cast once).
    """
    w1p, b1p, w2p, b2p, w3p, b3p = packed[:6]
    input_dim = packed.input_dim
    output_dim = packed.output_dim
    d_in, d_h = w1p.shape
    d_out = w3p.shape[1]

    x2d = x.reshape(-1, input_dim)
    n = x2d.shape[0]
    if out_dtype is None:
        out_dtype = x2d.dtype

    vmem_budget, multi_core = _tpu_vmem_plan()

    xbytes = jnp.dtype(x2d.dtype).itemsize
    obytes = jnp.dtype(out_dtype).itemsize
    cbytes = jnp.dtype(w1p.dtype).itemsize

    # Resident (single-buffered) weight/bias footprint.
    fixed = (d_in * d_h + d_h * d_h + d_h * d_out) * cbytes + (2 * d_h + d_out) * 4
    # Per-batch-row footprint: double-buffered x & out tiles + f32/bf16 temps.
    per_row = (2 * d_in * xbytes + 2 * d_out * obytes
               + d_in * cbytes + 3 * d_h * 4 + 2 * d_h * cbytes + d_out * 4)

    avail = max(vmem_budget - fixed, 0)
    tm_cap = 384 if multi_core else 1024
    if tile_m is not None:
        tm_cap = tile_m
    tm_fit = max((avail // per_row) // 16 * 16, 16)
    tm = min(tm_cap, tm_fit, _round_up(max(n, 1), 16))
    if multi_core and n > 16:
        # >= 2 grid steps so both TensorCores (v7x) get a share of the batch.
        tm = min(tm, _round_up(pl.cdiv(n, 2), 16))
    tm = max(_round_up(tm, 16), 16)

    n_pad = _round_up(max(n, 1), tm)
    grid = (n_pad // tm,)

    # Hot-path padding is x-only; it stays in its native dtype (cast in-kernel).
    xp = _pad2d(x2d, n_pad, d_in)

    vmem_limit = int(min(max(fixed + (tm * per_row * 5) // 4 + 4 * _MIB, 8 * _MIB),
                         vmem_budget))

    cost = pl.CostEstimate(
        flops=2 * n_pad * (d_in * d_h + d_h * d_h + d_h * d_out),
        transcendentals=0,
        bytes_accessed=n_pad * d_in * xbytes + fixed + n_pad * d_out * obytes,
    )

    resident = lambda i: (0, 0)
    single = pl.Buffered(1)  # constant index_map -> no re-fetch -> single buffer

    out_padded = pl.pallas_call(
        fnnet_kernel,
        out_shape=jax.ShapeDtypeStruct((n_pad, d_out), out_dtype),
        grid_spec=pltpu.PrefetchScalarGridSpec(
            num_scalar_prefetch=0,
            grid=grid,
            in_specs=[
                pl.BlockSpec((tm, d_in), lambda i: (i, 0)),                # x marches
                pl.BlockSpec((d_in, d_h), resident, pipeline_mode=single),  # resident weights
                pl.BlockSpec((1, d_h), resident, pipeline_mode=single),
                pl.BlockSpec((d_h, d_h), resident, pipeline_mode=single),
                pl.BlockSpec((1, d_h), resident, pipeline_mode=single),
                pl.BlockSpec((d_h, d_out), resident, pipeline_mode=single),
                pl.BlockSpec((1, d_out), resident, pipeline_mode=single),
            ],
            out_specs=pl.BlockSpec((tm, d_out), lambda i: (i, 0)),
        ),
        compiler_params=pltpu.CompilerParams(
            dimension_semantics=("parallel",),
            vmem_limit_bytes=vmem_limit,
        ),
        cost_estimate=cost,
    )(xp, w1p, b1p, w2p, b2p, w3p, b3p)

    # Slice padded rows / padded output lanes back off.
    return out_padded[:n, :output_dim]


def init_params(key, input_dim, interm_dim, output_dim):
    """Deterministic PyTorch-Linear-style init: U(-1/sqrt(fan_in), 1/sqrt(fan_in))."""
    ks = jax.random.split(key, 6)

    def lin(kw, kb, fan_in, fan_out):
        bound = 1.0 / jnp.sqrt(fan_in)
        w = jax.random.uniform(kw, (fan_out, fan_in), jnp.float32, -bound, bound)
        b = jax.random.uniform(kb, (fan_out,), jnp.float32, -bound, bound)
        return w, b

    w1, b1 = lin(ks[0], ks[1], input_dim, interm_dim)
    w2, b2 = lin(ks[2], ks[3], interm_dim, interm_dim)
    w3, b3 = lin(ks[4], ks[5], interm_dim, output_dim)
    return (w1, b1, w2, b2, w3, b3)


if __name__ == "__main__":
    key = jax.random.PRNGKey(0)
    input_dim, interm_dim, output_dim = 32, 64, 16
    batch = 24  # > tile_m below so the multi-tile + remainder path is exercised

    kx, kp = jax.random.split(key)
    x = jax.random.normal(kx, (batch, input_dim), jnp.float32)
    params = init_params(kp, input_dim, interm_dim, output_dim)

    # One-time weight packing (pad/transpose/bf16 cast hoisted out of the hot path).
    packed = pack_params(params)

    # tile_m=16 at this toy size -> grid=(2,), with 8 zero-padded rows sliced off.
    out = fnnet_forward(x, packed, tile_m=16)
    out = jax.block_until_ready(out)
    assert out.shape == (batch, output_dim)

    # Pure-JAX reference with identical bf16-operand / f32-accumulate arithmetic
    # (eval-mode dropout = identity).
    w1, b1, w2, b2, w3, b3 = params
    cd = jnp.bfloat16
    xb = x.astype(cd)
    h1 = jnp.maximum(jnp.dot(xb, w1.T.astype(cd), preferred_element_type=jnp.float32) + b1, 0.0).astype(cd)
    h2 = jnp.maximum(jnp.dot(h1, w2.T.astype(cd), preferred_element_type=jnp.float32) + b2, 0.0).astype(cd)
    ref = jnp.dot(h2, w3.T.astype(cd), preferred_element_type=jnp.float32) + b3
    assert jnp.allclose(out, ref, atol=2e-3, rtol=2e-3)

    # Loose sanity check against the full-f32 reference (bf16 operand rounding only).
    h1f = jnp.maximum(x @ w1.T + b1, 0.0)
    h2f = jnp.maximum(h1f @ w2.T + b2, 0.0)
    reff = h2f @ w3.T + b3
    assert jnp.allclose(out, reff, atol=2e-1, rtol=2e-1)

    print("KERNEL_OK")
</pallas_src>

<mosaic_0001>
module attributes {stable_mosaic.version = 11 : i64} {
  func.func @fnnet_kernel(%arg0: i32, %arg1: memref<16x128xf32, #tpu.memory_space<vmem>>, %arg2: memref<128x128xbf16, #tpu.memory_space<vmem>>, %arg3: memref<1x128xf32, #tpu.memory_space<vmem>>, %arg4: memref<128x128xbf16, #tpu.memory_space<vmem>>, %arg5: memref<1x128xf32, #tpu.memory_space<vmem>>, %arg6: memref<128x128xbf16, #tpu.memory_space<vmem>>, %arg7: memref<1x128xf32, #tpu.memory_space<vmem>>, %arg8: memref<16x128xf32, #tpu.memory_space<vmem>>) attributes {dimension_semantics = [#tpu.dimension_semantics<parallel>], iteration_bounds = array<i64: 2>, scalar_prefetch = 0 : i64, scratch_operands = 0 : i64, tpu.core_type = #tpu.core_type<tc>, window_params = [{transform_indices = @transform_0, window_bounds = array<i64: 16, 128>}, {pipeline_mode = #tpu.pipeline_mode<synchronous>, transform_indices = @transform_1, window_bounds = array<i64: 128, 128>}, {pipeline_mode = #tpu.pipeline_mode<synchronous>, transform_indices = @transform_2, window_bounds = array<i64: 1, 128>}, {pipeline_mode = #tpu.pipeline_mode<synchronous>, transform_indices = @transform_3, window_bounds = array<i64: 128, 128>}, {pipeline_mode = #tpu.pipeline_mode<synchronous>, transform_indices = @transform_4, window_bounds = array<i64: 1, 128>}, {pipeline_mode = #tpu.pipeline_mode<synchronous>, transform_indices = @transform_5, window_bounds = array<i64: 128, 128>}, {pipeline_mode = #tpu.pipeline_mode<synchronous>, transform_indices = @transform_6, window_bounds = array<i64: 1, 128>}, {transform_indices = @transform_7, window_bounds = array<i64: 16, 128>}]} {
    %c0 = arith.constant 0 : index
    %c0_0 = arith.constant 0 : index
    %0 = vector.load %arg1[%c0, %c0_0] : memref<16x128xf32, #tpu.memory_space<vmem>>, vector<16x128xf32>
    %1 = arith.truncf %0 : vector<16x128xf32> to vector<16x128xbf16>
    %c0_1 = arith.constant 0 : index
    %c0_2 = arith.constant 0 : index
    %2 = vector.load %arg2[%c0_1, %c0_2] : memref<128x128xbf16, #tpu.memory_space<vmem>>, vector<128x128xbf16>
    %cst = arith.constant dense<0.000000e+00> : vector<16x128xf32>
    %3 = tpu.matmul %1, %2, %cst {dimension_numbers = #tpu.dot_dimension_numbers<[1], [0], [0], [1], [0, 0, 1, 1], [], []>} : vector<16x128xbf16>, vector<128x128xbf16>, vector<16x128xf32> -> vector<16x128xf32>
    %c0_3 = arith.constant 0 : index
    %c0_4 = arith.constant 0 : index
    %4 = vector.load %arg3[%c0_3, %c0_4] : memref<1x128xf32, #tpu.memory_space<vmem>>, vector<1x128xf32>
    %5 = vector.broadcast %4 : vector<1x128xf32> to vector<16x128xf32>
    %6 = arith.addf %3, %5 : vector<16x128xf32>
    %cst_5 = arith.constant 0.000000e+00 : f32
    %7 = vector.broadcast %cst_5 : f32 to vector<16x128xf32>
    %8 = arith.maximumf %6, %7 : vector<16x128xf32>
    %9 = arith.truncf %8 : vector<16x128xf32> to vector<16x128xbf16>
    %c0_6 = arith.constant 0 : index
    %c0_7 = arith.constant 0 : index
    %10 = vector.load %arg4[%c0_6, %c0_7] : memref<128x128xbf16, #tpu.memory_space<vmem>>, vector<128x128xbf16>
    %cst_8 = arith.constant dense<0.000000e+00> : vector<16x128xf32>
    %11 = tpu.matmul %9, %10, %cst_8 {dimension_numbers = #tpu.dot_dimension_numbers<[1], [0], [0], [1], [0, 0, 1, 1], [], []>} : vector<16x128xbf16>, vector<128x128xbf16>, vector<16x128xf32> -> vector<16x128xf32>
    %c0_9 = arith.constant 0 : index
    %c0_10 = arith.constant 0 : index
    %12 = vector.load %arg5[%c0_9, %c0_10] : memref<1x128xf32, #tpu.memory_space<vmem>>, vector<1x128xf32>
    %13 = vector.broadcast %12 : vector<1x128xf32> to vector<16x128xf32>
    %14 = arith.addf %11, %13 : vector<16x128xf32>
    %cst_11 = arith.constant 0.000000e+00 : f32
    %15 = vector.broadcast %cst_11 : f32 to vector<16x128xf32>
    %16 = arith.maximumf %14, %15 : vector<16x128xf32>
    %17 = arith.truncf %16 : vector<16x128xf32> to vector<16x128xbf16>
    %c0_12 = arith.constant 0 : index
    %c0_13 = arith.constant 0 : index
    %18 = vector.load %arg6[%c0_12, %c0_13] : memref<128x128xbf16, #tpu.memory_space<vmem>>, vector<128x128xbf16>
    %cst_14 = arith.constant dense<0.000000e+00> : vector<16x128xf32>
    %19 = tpu.matmul %17, %18, %cst_14 {dimension_numbers = #tpu.dot_dimension_numbers<[1], [0], [0], [1], [0, 0, 1, 1], [], []>} : vector<16x128xbf16>, vector<128x128xbf16>, vector<16x128xf32> -> vector<16x128xf32>
    %c0_15 = arith.constant 0 : index
    %c0_16 = arith.constant 0 : index
    %20 = vector.load %arg7[%c0_15, %c0_16] : memref<1x128xf32, #tpu.memory_space<vmem>>, vector<1x128xf32>
    %21 = vector.broadcast %20 : vector<1x128xf32> to vector<16x128xf32>
    %22 = arith.addf %19, %21 : vector<16x128xf32>
    %c0_17 = arith.constant 0 : index
    %c0_18 = arith.constant 0 : index
    %23 = vector.load %arg8[%c0_17, %c0_18] : memref<16x128xf32, #tpu.memory_space<vmem>>, vector<16x128xf32>
    tpu.vector_store %arg8[%c0_17, %c0_18], %22 {strides = array<i32>} : memref<16x128xf32, #tpu.memory_space<vmem>>, vector<16x128xf32>,
    return
  }
  func.func @transform_0(%arg0: i32) -> (i32, i32) {
    %c0_i32 = arith.constant 0 : i32
    %c0_i32_0 = arith.constant 0 : i32
    return %arg0, %c0_i32 : i32, i32
  }
  func.func @transform_1(%arg0: i32) -> (i32, i32) {
    %c0_i32 = arith.constant 0 : i32
    %c0_i32_0 = arith.constant 0 : i32
    %c0_i32_1 = arith.constant 0 : i32
    return %c0_i32, %c0_i32_0 : i32, i32
  }
  func.func @transform_2(%arg0: i32) -> (i32, i32) {
    %c0_i32 = arith.constant 0 : i32
    %c0_i32_0 = arith.constant 0 : i32
    %c0_i32_1 = arith.constant 0 : i32
    return %c0_i32, %c0_i32_0 : i32, i32
  }
  func.func @transform_3(%arg0: i32) -> (i32, i32) {
    %c0_i32 = arith.constant 0 : i32
    %c0_i32_0 = arith.constant 0 : i32
    %c0_i32_1 = arith.constant 0 : i32
    return %c0_i32, %c0_i32_0 : i32, i32
  }
  func.func @transform_4(%arg0: i32) -> (i32, i32) {
    %c0_i32 = arith.constant 0 : i32
    %c0_i32_0 = arith.constant 0 : i32
    %c0_i32_1 = arith.constant 0 : i32
    return %c0_i32, %c0_i32_0 : i32, i32
  }
  func.func @transform_5(%arg0: i32) -> (i32, i32) {
    %c0_i32 = arith.constant 0 : i32
    %c0_i32_0 = arith.constant 0 : i32
    %c0_i32_1 = arith.constant 0 : i32
    return %c0_i32, %c0_i32_0 : i32, i32
  }
  func.func @transform_6(%arg0: i32) -> (i32, i32) {
    %c0_i32 = arith.constant 0 : i32
    %c0_i32_0 = arith.constant 0 : i32
    %c0_i32_1 = arith.constant 0 : i32
    return %c0_i32, %c0_i32_0 : i32, i32
  }
  func.func @transform_7(%arg0: i32) -> (i32, i32) {
    %c0_i32 = arith.constant 0 : i32
    %c0_i32_0 = arith.constant 0 : i32
    return %arg0, %c0_i32 : i32, i32
  }
}

</mosaic_0001>

<bundles_post_ra>
// kernel: tpu_custom_call.1
= control target key start
LH: loop header
LB: loop body
LE: loop exit
PB: predicated region body
PF: predicated region fallthrough
CT: control target
= control target key end

     0   :  { %s1376_s0 = inlined_call_operand.hbm [shape: f32[32,128], index: 0, kind: input, shape index: {}]   ;;  %s1377_s1 = inlined_call_operand.hbm [shape: bf16[128,128], index: 1, kind: input, shape index: {}]   ;;  %s1378_s2 = inlined_call_operand.vmem [shape: f32[1,128], index: 2, kind: input, shape index: {}]   ;;  %s1379_s3 = inlined_call_operand.hbm [shape: bf16[128,128], index: 3, kind: input, shape index: {}]   ;;  %s1380_s4 = inlined_call_operand.vmem [shape: f32[1,128], index: 4, kind: input, shape index: {}]   ;;  %s1381_s5 = inlined_call_operand.hbm [shape: bf16[128,128], index: 5, kind: input, shape index: {}]   ;;  %s1382_s6 = inlined_call_operand.vmem [shape: f32[1,128], index: 6, kind: input, shape index: {}]   ;;  %s1383_s7 = inlined_call_operand.hbm [shape: f32[32,128], index: 7, kind: output, shape index: {}]  }
   0x1   :  { %1384 = sst [smem:[#allocation15_spill]] %s1377_s1 }
   0x2   :  { %12 = vsyncpa [#allocation3], 0 }
   0x3   :  { %14 = vsyncpa [#allocation3 + $0x1], 0 }
   0x4   :  { %15 = vsyncpa [#allocation6], 0 }
   0x5   :  { %16 = vsyncpa [#allocation9], 0 }
   0x6   :  { %17 = vsyncpa [#allocation4], 0 }
   0x7   :  { %19 = vsyncpa [#allocation4 + $0x1], 0  ;;  %s1199_s24 = smov 0   ;;  %s1201_s25 = smov 0  }
   0x8   :  { %s1203_s26 = smov 0   ;;  %s1205_s27 = smov 0  }
   0x9 LB: > { %s1220_s28 = sadd.s32 4294967295, %s1148_s27   ;;  %s726_s29 = sadd.s32 4294967294, %s1148_s27   ;;  %s1148_s27 = sphi %s1205_s27, %s1396_s27   ;;  %s1144_s26 = sphi %s1203_s26, %s1395_s26   ;;  %s1140_s25 = sphi %s1201_s25, %s1394_s25   ;;  %s1136_s24 = sphi %s1199_s24, %s1393_s24  }
   0xa   : > { %p45_p0 = scmp.ne.s32.totalorder %s1140_s25, %s1136_s24  ;;  %p46_p1 = scmp.eq.s32.totalorder %s1220_s28, 0 }
   0xb   : > { %p195_p2 = scmp.eq.s32.totalorder %s1220_s28, 1  ;;  %p201_p3 = scmp.eq.s32.totalorder %s726_s29, 1 }
   0xc   : > { %p1229_p4 = por %p46_p1, %p45_p0  ;;  %p727_p5 = scmp.ge.s32.totalorder %s1148_s27, 1 }
   0xd   : > { %p1234_p6 = por %p201_p3, %p45_p0  ;;  %p208_p7 = scmp.lt.s32.totalorder %s1148_s27, 3 }
   0xe   : > { %s1387_s1 = sld [smem:[#allocation15_spill]]  ;;  %s1150_s13 = smov [#allocation5]  }
   0xf   : > { %p1242_p8 = pnand %p727_p5, %p208_p7  ;;  %s221_s14 = sshll.u32 %s1150_s13, 4  ;;  %s222_s14 = int_to_ptr.vmem [resolvable:$true] %s221_s14 }
  0x10   : > { %s236_s18 = sshll.u32 %s1379_s3, 4  ;;  %s1151_s19 = smov 64   ;;  %s237_s18 = int_to_ptr.hbm [resolvable:$true] %s236_s18 }
  0x11   : > { %p884_p9 = pneg %p1242_p8  ;;  %s1152_s20 = smov 4  }
  0x12   : > { %s1153_s21 = smov [#allocation7]   ;;  %s253_s9 = sshll.u32 %s1381_s5, 4  ;;  %s254_s9 = int_to_ptr.hbm [resolvable:$true] %s253_s9 }
  0x13   : > { %p1250_p10 = pnand %p884_p9, %p46_p1  ;;  %s238_s22 = sshll.u32 %s1153_s21, 4  ;;  %s239_s22 = int_to_ptr.vmem [resolvable:$true] %s238_s22 }
  0x14   : > { %s219_s11 = sshll.u32 %s1387_s1, 4  ;;  %s1154_s10 = smov [#allocation8]   ;;  %s220_s11 = int_to_ptr.hbm [resolvable:$true] %s219_s11 }
  0x15   : > { %887 = dma.hbm_to_vmem [thread:$0]  (!%p1250_p10), %s220_s11, 1024, %s222_s14, [#allocation6], %s1151_s19, %s1151_s19, %s1152_s20  }
  0x16   : > { %890 = dma.hbm_to_vmem [thread:$0]  (!%p1250_p10), %s237_s18, 1024, %s239_s22, [#allocation6], %s1151_s19, %s1151_s19, %s1152_s20  }
  0x17   : > { %s255_s13 = sshll.u32 %s1154_s10, 4  ;;  %s1266_s11 = sadd.s32 1, %s1148_s27   ;;  %s256_s13 = int_to_ptr.vmem [resolvable:$true] %s255_s13 }
  0x18   : > { %893 = dma.hbm_to_vmem [thread:$0]  (!%p1250_p10), %s254_s9, 1024, %s256_s13, [#allocation9], %s1151_s19, %s1151_s19, %s1152_s20  }
  0x19   : > { %s29_s14 = ssub.s32 %s1148_s27, %s1266_s11  ;;  %s32_s16 = sadd.s32 1, %s1144_s26 }
  0x1a   : > { %p30_p12 = scmp.eq.s32.totalorder %s29_s14, 0  ;;  %p39_p13 = scmp.ne.s32.totalorder %s1144_s26, %s1140_s25 }
  0x1b   : > { %p40_p0 = scmp.eq.s32.totalorder %s1148_s27, 0  ;;  %p905_p3 = scmp.lt.s32.totalorder %s1148_s27, 2 }
  0x1c   : > { %s1278_s17 = scalar_select %p30_p12, %s1144_s26, %s32_s16  }
  0x1d   : > { %p41_p5 = por %p40_p0, %p39_p13  ;;  %p1282_p7 = por %p195_p2, %p39_p13 }
  0x1e   : > { %s272_s21 = sand.u32 1, %s1144_s26   ;;  %s842_s22 = sshll.u32 %s1148_s27, 4 }
  0x1f   : > { %s732_s15 = sshll.u32 %s272_s21, 4  ;;  %s281_s20 = scalar_lea.hbm %s1376_s0, %s842_s22 }
  0x20   : > { %s282_s29 = sshll.u32 %s281_s20, 4  ;;  %s276_s9 = scalar_lea.vmem [#allocation2], %s732_s15  ;;  %s283_s29 = int_to_ptr.hbm [resolvable:$true] %s282_s29 }
  0x21   : > { %s284_s10 = sshll.u32 %s276_s9, 4  ;;  %p1293_p9 = pnand %p905_p3, %p41_p5  ;;  %s285_s10 = int_to_ptr.vmem [resolvable:$true] %s284_s10 }
  0x22   : > { %s273_s14 = scalar_lea.sflag [#allocation3], %s272_s21  ;;  %s1044_s16 = sshra.s32 %s283_s29, 4  ;;  %s1045_s16 = int_to_ptr.hbm [resolvable:$true] %s1044_s16 }
  0x23   : > { %s1046_s1 = scalar_lea.hbm %s1045_s16, 16  ;;  %p1048_p10 = pneg %p1293_p9 }
  0x24   : > { %p1047_p2 = scmp.ne.s32.totalorder %s1045_s16, %s1046_s1  ;;  %s1051_s23 = scalar_lea.hbm %s1376_s0, 32 }
  0x25   : > { %p1052_p0 = scmp.lt.s32.totalorder %s1045_s16, %s1376_s0  ;;  %p1053_p3 = scmp.lt.s32.totalorder %s1051_s23, %s1046_s1 }
  0x26   : > { %p1049_p12 = pnand %p1048_p10, %p1047_p2 }
  0x27   : > { %p1054_p5 = por %p1053_p3, %p1052_p0 }
  0x28   : > { %p1050_p13 = pneg %p1049_p12 }
  0x2a   : > { %p1055_p11 = pnand %p1054_p5, %p1050_p13 }
  0x2c   : > { %1058 = shalt.err (!%p1055_p11)
}
  0x2d   : > { %s1155_s21 = smov 128   ;;  %s1156_s9 = smov 8  }
  0x2e   : > { %897 = dma.hbm_to_vmem [thread:$0]  (!%p1293_p9), %s283_s29, 256, %s285_s10, %s273_s14, %s1155_s21, %s1155_s21, %s1156_s9  }
  0x2f   : > { %296 = sbr.rel (%p1242_p8) target bundleno = 515 (0x203), region = 48  ;;  %s1310_s22 = sand.u32 (!%p1242_p8), 1, %s1140_s25  }
  0x30   : > { %s736_s16 = sshll.u32 (!%p1242_p8), %s1310_s22, 4  ;;  %s299_s1 = scalar_lea.sflag (!%p1242_p8), [#allocation3], %s1310_s22 }
  0x31   : > { %s1316_s15 = scalar_lea.vmem (!%p1242_p8), [#allocation2], %s736_s16 }
  0x34   : > { %1119 = dma.done.wait (%p1229_p4), %s299_s1, 256  }
  0x35   : > { %1121 = vsyncadd (%p1229_p4), %s299_s1, 4294967040 }
  0x36   : > { %1123 = dma.done.wait (%p46_p1), [#allocation6], 2048  }
  0x37   : > { %1125 = vsyncadd (%p46_p1), [#allocation6], 4294965248 }
  0x38   : > { %1127 = dma.done.wait (%p46_p1), [#allocation9], 1024  }
  0x39   : > { %1129 = vsyncadd (%p46_p1), [#allocation9], 4294966272  ;;  %v850_v0 = vld [vmem:[#allocation5 + $0x38] sm:$0xff]  ;;  %v849_v1 = vld [vmem:[#allocation5 + $0x30] sm:$0xff]  ;;  %s867_s23 = sshll.u32 %s1220_s28, 4  ;;  %s348_s9 = scalar_lea.vmem [#allocation10], %s736_s16 }
  0x3a   : > { %422 = vmatpush.bf16.msra.mxu0 %v850_v0  ;;  %v858_v2 = vld [vmem:[#allocation7 + $0x38] sm:$0xff]  ;;  %v857_v3 = vld [vmem:[#allocation7 + $0x30] sm:$0xff]  ;;  %v848_v4 = vld [vmem:[#allocation5 + $0x28] sm:$0xff]  ;;  %s620_s21 = scalar_lea.hbm %s1383_s7, %s867_s23  ;;  %s621_s1 = sshll.u32 %s348_s9, 4  ;;  %s622_s1 = int_to_ptr.vmem [resolvable:$true] %s621_s1 }
  0x3b   : > { %507 = vmatpush.bf16.msra.mxu1 %v858_v2  ;;  %v856_v5 = vld [vmem:[#allocation7 + $0x28] sm:$0xff]  ;;  %v847_v6 = vld [vmem:[#allocation5 + $0x20] sm:$0xff]  ;;  %v846_v8 = vld [vmem:[#allocation5 + $0x18] sm:$0xff]  ;;  %s609_s30 = scalar_lea.sflag [#allocation4], %s1310_s22  ;;  %s1094_s16 = scalar_lea.hbm %s1383_s7, 32 }
  0x3c   : > { %v855_v7 = vld [vmem:[#allocation7 + $0x20] sm:$0xff]  ;;  %v845_v9 = vld [vmem:[#allocation5 + $0x10] sm:$0xff]  ;;  %v844_v10 = vld [vmem:[#allocation5 + $0x8] sm:$0xff] }
  0x3d   : > { %v843_v11 = vld [vmem:[#allocation5] sm:$0xff]  ;;  %v352_v13 = vld [vmem:[%s1316_s15 + $0x8] sm:$0xff]  ;;  %v853_v16 = vld [vmem:[#allocation7 + $0x10] sm:$0xff] }
  0x3e   : > { %423 = vmatpush.bf16.msra.mxu0 %v849_v1  ;;  %v351_v12 = vld [vmem:[%s1316_s15] sm:$0xff]  ;;  %v854_v15 = vld [vmem:[#allocation7 + $0x18] sm:$0xff]  ;;  %v852_v17 = vld [vmem:[#allocation7 + $0x8] sm:$0xff]  ;;  %s623_s15 = sshll.u32 %s620_s21, 4  ;;  %s624_s15 = int_to_ptr.hbm [resolvable:$true] %s623_s15 }
  0x3f   : > { %508 = vmatpush.bf16.msra.mxu1 %v857_v3  ;;  %v353_v14 = vpack.c.bf16 %v352_v13, %v351_v12  ;;  %v851_v18 = vld [vmem:[#allocation7] sm:$0xff]  ;;  %v866_v19 = vld [vmem:[#allocation8 + $0x38] sm:$0xff]  ;;  %v865_v20 = vld [vmem:[#allocation8 + $0x30] sm:$0xff]  ;;  %s1088_s12 = sshra.s32 %s624_s15, 4  ;;  %s1089_s12 = int_to_ptr.hbm [resolvable:$true] %s1088_s12 }
  0x40   : > { %592 = vmatpush.bf16.msra.mxu2 %v866_v19  ;;  %v864_v21 = vld [vmem:[#allocation8 + $0x28] sm:$0xff]  ;;  %v863_v22 = vld [vmem:[#allocation8 + $0x20] sm:$0xff]  ;;  %v862_v31 = vld [vmem:[#allocation8 + $0x18] sm:$0xff]  ;;  %s1090_s28 = scalar_lea.hbm %s1089_s12, 16  ;;  %p1095_p11 = scmp.lt.s32.totalorder %s1089_s12, %s1383_s7 }
  0x41   : > { %v951_v24 = vld [vmem:[%s1378_s2] ss:$0 sm:$0xff]  ;;  %v861_v32 = vld [vmem:[#allocation8 + $0x10] sm:$0xff]  ;;  %v860_v33 = vld [vmem:[#allocation8 + $0x8] sm:$0xff]  ;;  %p1091_p1 = scmp.ne.s32.totalorder %s1089_s12, %s1090_s28  ;;  %p1096_p9 = scmp.lt.s32.totalorder %s1094_s16, %s1090_s28 }
  0x42   : > { %424 = vmatpush.bf16.msra.mxu0 %v848_v4  ;;  %v859_v34 = vld [vmem:[#allocation8] sm:$0xff] }
  0x43   : > { %509 = vmatpush.bf16.msra.mxu1 %v856_v5  ;;  %v952_v36 = vld [vmem:[%s1380_s4] ss:$0 sm:$0xff]  ;;  %p1092_p4 = pnand %p1091_p1, %p1282_p7  ;;  %p1097_p2 = por %p1096_p9, %p1095_p11 }
  0x44   : > { %593 = vmatpush.bf16.msra.mxu2 %v865_v20  ;;  %v953_v43 = vld [vmem:[%s1382_s6] ss:$0 sm:$0xff] }
  0x45   : > { %p1093_p8 = pneg %p1092_p4 }
  0x46   : > { %425 = vmatpush.bf16.msra.mxu0 %v847_v6 }
  0x47   : > { %510 = vmatpush.bf16.msra.mxu1 %v855_v7  ;;  %p1098_p10 = pnand %p1097_p2, %p1093_p8 }
  0x48   : > { %594 = vmatpush.bf16.msra.mxu2 %v864_v21 }
  0x4a   : > { %426 = vmatpush.bf16.msra.mxu0 %v846_v8 }
  0x4b   : > { %511 = vmatpush.bf16.msra.mxu1 %v854_v15 }
  0x4c   : > { %595 = vmatpush.bf16.msra.mxu2 %v863_v22 }
  0x4e   : > { %427 = vmatpush.bf16.msra.mxu0 %v845_v9 }
  0x4f   : > { %512 = vmatpush.bf16.msra.mxu1 %v853_v16 }
  0x50   : > { %596 = vmatpush.bf16.msra.mxu2 %v862_v31 }
  0x52   : > { %428 = vmatpush.bf16.msra.mxu0 %v844_v10 }
  0x53   : > { %513 = vmatpush.bf16.msra.mxu1 %v852_v17 }
  0x54   : > { %597 = vmatpush.bf16.msra.mxu2 %v861_v32 }
  0x56   : > { %429 = vmatpush.bf16.msra.mxu0 %v843_v11 }
  0x57   : > { %514 = vmatpush.bf16.msra.mxu1 %v851_v18 }
  0x58   : > { %598 = vmatpush.bf16.msra.mxu2 %v860_v33 }
  0x59   : > { %430 = vmatmul.bf16.vlgmr.msra.gmra.mxu0 %v353_v14 }
  0x5c   : > { %599 = vmatpush.bf16.msra.mxu2 %v859_v34 }
  0xd6   : > { %v431_v23 = vpop.f32.mrf.mxu0 }
  0xd7   : > { %v432_v25 = vadd.f32 %v951_v24, %v431_v23 }
  0xd9   : > { %v436_v28 = vmax.f32 %v432_v25, 0.0 }
  0xde   : > { %v433_v26 = vpop.f32.mrf.mxu0 }
  0xdf   : > { %v434_v27 = vadd.f32 %v951_v24, %v433_v26 }
  0xe1   : > { %v437_v29 = vmax.f32 %v434_v27, 0.0 }
  0xe3   : > { %v438_v30 = vpack.c.bf16 %v437_v29, %v436_v28 }
  0xe5   : > { %515 = vmatmul.bf16.vlgmr.msra.gmra.mxu1 %v438_v30 }
 0x162   : > { %v516_v35 = vpop.f32.mrf.mxu1 }
 0x163   : > { %v517_v37 = vadd.f32 %v952_v36, %v516_v35 }
 0x165   : > { %v521_v40 = vmax.f32 %v517_v37, 0.0 }
 0x16a   : > { %v518_v38 = vpop.f32.mrf.mxu1 }
 0x16b   : > { %v519_v39 = vadd.f32 %v952_v36, %v518_v38 }
 0x16d   : > { %v522_v41 = vmax.f32 %v519_v39, 0.0 }
 0x16f   : > { %v523_v42 = vpack.c.bf16 %v522_v41, %v521_v40 }
 0x171   : > { %600 = vmatmul.bf16.vlgmr.msra.gmra.mxu2 %v523_v42 }
 0x1f4   : > { %v601_v44 = vpop.f32.mrf.mxu2 }
 0x1f5   : > { %v602_v45 = vadd.f32 %v953_v43, %v601_v44 }
 0x1f7   : > { %606 = vst [vmem:[%s348_s9] sm:$0xff] %v602_v45 }
 0x1fc   : > { %v603_v46 = vpop.f32.mrf.mxu2 }
 0x1fd   : > { %v604_v47 = vadd.f32 %v953_v43, %v603_v46 }
 0x1ff   : > { %607 = vst [vmem:[%s348_s9 + $0x8] sm:$0xff] %v604_v47 }
 0x200   : > { %1101 = shalt.err (!%p1098_p10)
}
 0x201   : > { %s1157_s22 = smov 128   ;;  %s1158_s23 = smov 8  }
 0x202   : > { %882 = dma.vmem_to_hbm [thread:$0]  (%p1282_p7), %s622_s1, 256, %s624_s15, %s609_s30, %s1157_s22, %s1157_s22, %s1158_s23  }
 0x203 PF: > { %s638_s19 = sand.u32 1, %s1136_s24   ;;  %p1392_p12 = scmp.ge.s32.totalorder %s1148_s27, 2 }
 0x204   : > { %s639_s20 = scalar_lea.sflag [#allocation4], %s638_s19 }
 0x205   : > { %p899_p13 = pnand %p1392_p12, %p1234_p6 }
 0x207   : > { %p900_p0 = pneg %p899_p13 }
 0x209   : > { %1131 = dma.done.wait (%p900_p0), %s639_s20, 256  }
 0x20a   : > { %1133 = vsyncadd (%p900_p0), %s639_s20, 4294967040  ;;  %p22_p3 = scmp.ge.s32.totalorder %s1266_s11, 4   ;;  %s1393_s24 = smov %s1140_s25 }
 0x20b   : > { %s1394_s25 = smov %s1144_s26  ;;  %s1395_s26 = smov %s1278_s17 }
 0x20c   : > { %s1396_s27 = smov %s1266_s11  ;;  %24 = sbr.rel (!%p22_p3) target bundleno = 9 (0x9), region = 105 }
 0x211   :  { %645 = vsyncpa [#allocation3], 1 }
 0x212   :  { %647 = vsyncpa [#allocation3 + $0x1], 1 }
 0x213   :  { %648 = vsyncpa [#allocation6], 1 }
 0x214   :  { %649 = vsyncpa [#allocation9], 1 }
 0x215   :  { %650 = vsyncpa [#allocation4], 1 }
 0x216   :  { %652 = vsyncpa [#allocation4 + $0x1], 1 }

</bundles_post_ra>
